<compile_context>
chip_gen: v7x
topology: tpu7x:2x2x1
jax: 0.10.0
libtpu: 0.0.40
codegen_flags: <defaults>
</compile_context>

<pallas_src>
import functools

import jax
import jax.numpy as jnp
from jax import lax
from jax.experimental import pallas as pl
from jax.experimental.pallas import tpu as pltpu


def _round_up(n, m):
    return ((n + m - 1) // m) * m


def decoder_gru_kernel(x_ref, h0_ref, wih_ref, whh_ref, bih_ref, bhh_ref,
                       wfc_ref, bfc_ref, probs_ref, hout_ref, gi_ref,
                       *, valid_vocab, batch):
    """DecoderGru forward: ReLU -> S-step GRU -> Linear -> Softmax(dim=1).

    Lane-aligned layout (gate g occupies lanes [g*Hp, g*Hp + H), rest zero):
      x_ref    : (S*B, H)    bf16   embeddings, flattened sequence-major
      h0_ref   : (B, Hp)     f32    initial hidden, zero-padded to Hp lanes
      wih_ref  : (H,  3*Hp)  bf16
      whh_ref  : (Hp, 3*Hp)  bf16   rows >= H are zero
      bih/bhh  : (1,  3*Hp)  f32
      wfc_ref  : (Hp, Vp)    bf16   rows >= H / cols >= V are zero
      bfc_ref  : (1,  Vp)    f32
      probs_ref: (B,  Vp)    f32    softmax(fc(output[0]))
      hout_ref : (B,  Hp)    f32    final hidden state
      gi_ref   : (S*B, 3*Hp) f32    scratch: hoisted input-side gate pre-acts

    Gate order follows PyTorch [r, z, n]:
      r = sigmoid(x W_ir^T + b_ir + h W_hr^T + b_hr)
      z = sigmoid(x W_iz^T + b_iz + h W_hz^T + b_hz)
      n = tanh  (x W_in^T + b_in + r * (h W_hn^T + b_hn))
      h' = (1 - z) * n + z * h
    """
    B = batch
    S = x_ref.shape[0] // B
    Hp = whh_ref.shape[0]

    # ---- 1) Hoisted input-side gate matmul: one big MXU dot (relu fused). ---
    x = jnp.maximum(x_ref[...], 0.0)                                 # ReLU
    gi_all = jnp.dot(x, wih_ref[...],
                     preferred_element_type=jnp.float32) + bih_ref[...]
    gi_ref[...] = gi_all

    whh = whh_ref[...]
    b_hh = bhh_ref[...]

    def gru_cell(gi, h):
        # Only the h-dependent dot remains on the serial critical path.
        gh = jnp.dot(h.astype(whh.dtype), whh,
                     preferred_element_type=jnp.float32) + b_hh
        # Gate slices sit at 128-aligned lane offsets 0 / Hp / 2*Hp.
        i_r, i_z, i_n = gi[:, :Hp], gi[:, Hp:2 * Hp], gi[:, 2 * Hp:]
        h_r, h_z, h_n = gh[:, :Hp], gh[:, Hp:2 * Hp], gh[:, 2 * Hp:]
        r = jax.nn.sigmoid(i_r + h_r)
        z = jax.nn.sigmoid(i_z + h_z)
        n = jnp.tanh(i_n + r * h_n)
        return (1.0 - z) * n + z * h                                 # f32 carry

    # ---- 2) Time step 0: its hidden is GRU output[0] -> fc -> softmax. -----
    h1 = gru_cell(gi_all[:B, :], h0_ref[...])

    logits = jnp.dot(h1.astype(wfc_ref.dtype), wfc_ref[...],
                     preferred_element_type=jnp.float32) + bfc_ref[...]
    m = jnp.max(logits, axis=-1, keepdims=True)
    e = jnp.exp(logits - m)
    # Zero the lane-padded vocab columns (robust; no magic bias constant).
    col = lax.broadcasted_iota(jnp.int32, e.shape, 1)
    e = jnp.where(col < valid_vocab, e, 0.0)
    # Exact divide: the denominator is off the recurrent critical path, so the
    # approximate reciprocal bought nothing and cost softmax accuracy.
    probs_ref[...] = (e / jnp.sum(e, axis=-1, keepdims=True)).astype(
        probs_ref.dtype)

    # ---- 3) Remaining steps: hidden state carried as an f32 loop value. ----
    def step(t, h):
        start = pl.multiple_of(t * B, B)
        return gru_cell(gi_ref[pl.ds(start, B), :], h)

    # unroll=True only because S is small here.
    # TODO(synk): switch to partial unroll (e.g. unroll=4) for large S to
    # avoid inflating live ranges / flipping into a spill-bound regime.
    h_last = lax.fori_loop(1, S, step, h1, unroll=True)
    hout_ref[...] = h_last.astype(hout_ref.dtype)


@jax.jit
def decoder_gru_forward(tokens, hidden, params):
    """Pallas-backed forward of DecoderGru.

    tokens: (S, B) int32 token indices
    hidden: (1, B, H) float32
    returns (probs (B, V), decoder_hidden (1, B, H))
    """
    emb_table = params["embedding"]                      # (V, H)
    S, B = tokens.shape
    H = emb_table.shape[1]
    V = params["w_fc"].shape[0]
    Hp = _round_up(H, 128)                               # per-gate lane tile
    Vp = _round_up(V, 128)                               # lane-dense probs

    # Embedding lookup (irregular gather) stays in plain JAX as glue.
    # TODO(synk): at production S*B*H, gather inside the kernel (scalar-
    # prefetched tokens + row-indexed DMA) to avoid the HBM round trip.
    x = jnp.take(emb_table, tokens.reshape(-1), axis=0).astype(jnp.bfloat16)

    def pad_gates(w):   # (rows, 3H) -> (rows, 3*Hp); gate g at [g*Hp, g*Hp+H)
        rows = w.shape[0]
        w3 = w.reshape(rows, 3, H)
        return jnp.pad(w3, ((0, 0), (0, 0), (0, Hp - H))).reshape(rows, 3 * Hp)

    # bf16 matmul operands (f32 accumulation in-kernel), f32 biases / state.
    wih_p = pad_gates(params["w_ih"].T).astype(jnp.bfloat16)          # (H, 3Hp)
    whh_p = jnp.pad(pad_gates(params["w_hh"].T),
                    ((0, Hp - H), (0, 0))).astype(jnp.bfloat16)        # (Hp,3Hp)
    bih_p = pad_gates(params["b_ih"].reshape(1, 3 * H))                # (1, 3Hp)
    bhh_p = pad_gates(params["b_hh"].reshape(1, 3 * H))                # (1, 3Hp)
    wfc_p = jnp.pad(params["w_fc"].T,
                    ((0, Hp - H), (0, Vp - V))).astype(jnp.bfloat16)   # (Hp, Vp)
    bfc_p = jnp.pad(params["b_fc"].reshape(1, V), ((0, 0), (0, Vp - V)))
    h0_p = jnp.pad(hidden[0], ((0, 0), (0, Hp - H)))                   # (B, Hp)

    vmem = functools.partial(pl.BlockSpec, memory_space=pltpu.MemorySpace.VMEM)

    # Everything fits in VMEM at these sizes, so the whole S-step recurrence
    # runs in one gridless invocation (hidden state stays in registers).
    # TODO(synk): at production H/V, tile the fc weight over the vocab axis
    # (own grid axis + two-pass softmax, vocab tiles of 512-2048 lanes) and add
    # a "parallel" batch grid axis so v7x's second TensorCore is used and the
    # (Hp, Vp) slab (x2 for double-buffering) stays under its 64 MiB VMEM.
    probs_p, hout_p = pl.pallas_call(
        functools.partial(decoder_gru_kernel, valid_vocab=V, batch=B),
        out_shape=(jax.ShapeDtypeStruct((B, Vp), jnp.float32),
                   jax.ShapeDtypeStruct((B, Hp), jnp.float32)),
        in_specs=[vmem() for _ in range(8)],
        out_specs=(vmem(), vmem()),
        scratch_shapes=[pltpu.VMEM((S * B, 3 * Hp), jnp.float32)],
        compiler_params=pltpu.CompilerParams(
            vmem_limit_bytes=32 * 1024 * 1024),
    )(x, h0_p, wih_p, whh_p, bih_p, bhh_p, wfc_p, bfc_p)

    return probs_p[:, :V], hout_p[None, :, :H]


def reference_forward(tokens, hidden, params):
    """Pure-JAX f32 reference reproducing the PyTorch module semantics."""
    emb = jnp.take(params["embedding"], tokens, axis=0)   # (S, B, H)
    x = jnp.maximum(emb, 0.0)
    H = params["embedding"].shape[1]
    h = hidden[0]
    w_ih, w_hh = params["w_ih"], params["w_hh"]
    b_ih, b_hh = params["b_ih"], params["b_hh"]
    outputs = []
    for t in range(tokens.shape[0]):
        gi = x[t] @ w_ih.T + b_ih
        gh = h @ w_hh.T + b_hh
        i_r, i_z, i_n = gi[:, :H], gi[:, H:2 * H], gi[:, 2 * H:]
        h_r, h_z, h_n = gh[:, :H], gh[:, H:2 * H], gh[:, 2 * H:]
        r = jax.nn.sigmoid(i_r + h_r)
        z = jax.nn.sigmoid(i_z + h_z)
        n = jnp.tanh(i_n + r * h_n)
        h = (1.0 - z) * n + z * h
        outputs.append(h)
    logits = outputs[0] @ params["w_fc"].T + params["b_fc"]
    probs = jax.nn.softmax(logits, axis=1)
    return probs, h[None]


def init_params(key, hidden_size, output_size):
    """Deterministic synthetic parameters with PyTorch-like shapes."""
    H, V = hidden_size, output_size
    ks = jax.random.split(key, 7)
    bound = 1.0 / jnp.sqrt(jnp.float32(H))
    uni = lambda k, shape: jax.random.uniform(
        k, shape, jnp.float32, -bound, bound)
    return {
        "embedding": jax.random.normal(ks[0], (V, H), jnp.float32) * 0.1,
        "w_ih": uni(ks[1], (3 * H, H)),     # [W_ir; W_iz; W_in]
        "w_hh": uni(ks[2], (3 * H, H)),     # [W_hr; W_hz; W_hn]
        "b_ih": uni(ks[3], (3 * H,)),
        "b_hh": uni(ks[4], (3 * H,)),
        "w_fc": uni(ks[5], (V, H)),
        "b_fc": uni(ks[6], (V,)),
    }


if __name__ == "__main__":
    S, B, H, V = 4, 8, 32, 64   # seq_len, batch, hidden_size, output_size(vocab)

    root = jax.random.PRNGKey(0)
    k_params, k_tok, k_hid = jax.random.split(root, 3)

    params = init_params(k_params, H, V)
    tokens = jax.random.randint(k_tok, (S, B), 0, V, dtype=jnp.int32)
    hidden = jax.random.normal(k_hid, (1, B, H), jnp.float32)

    probs, dec_hidden = decoder_gru_forward(tokens, hidden, params)
    jax.block_until_ready((probs, dec_hidden))

    # Sanity check against a pure-JAX f32 reference of the PyTorch semantics.
    # Tolerances account for bf16 matmul operands (f32 accumulation / carry);
    # softmax uses an exact divide, so rows sum to 1 tightly.
    ref_probs, ref_hidden = reference_forward(tokens, hidden, params)
    assert probs.shape == (B, V) and dec_hidden.shape == (1, B, H)
    assert jnp.allclose(probs, ref_probs, atol=1e-2, rtol=1e-2)
    assert jnp.allclose(dec_hidden, ref_hidden, atol=3e-2, rtol=3e-2)
    assert jnp.allclose(jnp.sum(probs, axis=1), 1.0, atol=1e-3)

    print("KERNEL_OK")
</pallas_src>

<mosaic_0001>
module attributes {stable_mosaic.version = 11 : i64} {
  func.func @decoder_gru_kernel(%arg0: memref<32x32xbf16, #tpu.memory_space<vmem>>, %arg1: memref<8x128xf32, #tpu.memory_space<vmem>>, %arg2: memref<32x384xbf16, #tpu.memory_space<vmem>>, %arg3: memref<128x384xbf16, #tpu.memory_space<vmem>>, %arg4: memref<1x384xf32, #tpu.memory_space<vmem>>, %arg5: memref<1x384xf32, #tpu.memory_space<vmem>>, %arg6: memref<128x128xbf16, #tpu.memory_space<vmem>>, %arg7: memref<1x128xf32, #tpu.memory_space<vmem>>, %arg8: memref<8x128xf32, #tpu.memory_space<vmem>>, %arg9: memref<8x128xf32, #tpu.memory_space<vmem>>, %arg10: memref<32x384xf32, #tpu.memory_space<vmem>>) attributes {dimension_semantics = [], scalar_prefetch = 0 : i64, scratch_operands = 1 : i64, tpu.core_type = #tpu.core_type<tc>} {
    %c0 = arith.constant 0 : index
    %c0_0 = arith.constant 0 : index
    %0 = vector.load %arg0[%c0, %c0_0] : memref<32x32xbf16, #tpu.memory_space<vmem>>, vector<32x32xbf16>
    %cst = arith.constant 0.000000e+00 : bf16
    %1 = vector.broadcast %cst : bf16 to vector<32x32xbf16>
    %2 = arith.maximumf %0, %1 : vector<32x32xbf16>
    %c0_1 = arith.constant 0 : index
    %c0_2 = arith.constant 0 : index
    %3 = vector.load %arg2[%c0_1, %c0_2] : memref<32x384xbf16, #tpu.memory_space<vmem>>, vector<32x384xbf16>
    %cst_3 = arith.constant dense<0.000000e+00> : vector<32x384xf32>
    %4 = tpu.matmul %2, %3, %cst_3 {dimension_numbers = #tpu.dot_dimension_numbers<[1], [0], [0], [1], [0, 0, 1, 1], [], []>} : vector<32x32xbf16>, vector<32x384xbf16>, vector<32x384xf32> -> vector<32x384xf32>
    %c0_4 = arith.constant 0 : index
    %c0_5 = arith.constant 0 : index
    %5 = vector.load %arg4[%c0_4, %c0_5] : memref<1x384xf32, #tpu.memory_space<vmem>>, vector<1x384xf32>
    %6 = vector.broadcast %5 : vector<1x384xf32> to vector<32x384xf32>
    %7 = arith.addf %4, %6 : vector<32x384xf32>
    %c0_6 = arith.constant 0 : index
    %c0_7 = arith.constant 0 : index
    %8 = vector.load %arg10[%c0_6, %c0_7] : memref<32x384xf32, #tpu.memory_space<vmem>>, vector<32x384xf32>
    tpu.vector_store %arg10[%c0_6, %c0_7], %7 {strides = array<i32>} : memref<32x384xf32, #tpu.memory_space<vmem>>, vector<32x384xf32>,
    %c0_8 = arith.constant 0 : index
    %c0_9 = arith.constant 0 : index
    %9 = vector.load %arg3[%c0_8, %c0_9] : memref<128x384xbf16, #tpu.memory_space<vmem>>, vector<128x384xbf16>
    %c0_10 = arith.constant 0 : index
    %c0_11 = arith.constant 0 : index
    %10 = vector.load %arg5[%c0_10, %c0_11] : memref<1x384xf32, #tpu.memory_space<vmem>>, vector<1x384xf32>
    %11 = vector.extract_strided_slice %7 {offsets = [0, 0], sizes = [8, 384], strides = [1, 1]} : vector<32x384xf32> to vector<8x384xf32>
    %c0_12 = arith.constant 0 : index
    %c0_13 = arith.constant 0 : index
    %12 = vector.load %arg1[%c0_12, %c0_13] : memref<8x128xf32, #tpu.memory_space<vmem>>, vector<8x128xf32>
    %13 = arith.truncf %12 : vector<8x128xf32> to vector<8x128xbf16>
    %cst_14 = arith.constant dense<0.000000e+00> : vector<8x384xf32>
    %14 = tpu.matmul %13, %9, %cst_14 {dimension_numbers = #tpu.dot_dimension_numbers<[1], [0], [0], [1], [0, 0, 1, 1], [], []>} : vector<8x128xbf16>, vector<128x384xbf16>, vector<8x384xf32> -> vector<8x384xf32>
    %15 = vector.broadcast %10 : vector<1x384xf32> to vector<8x384xf32>
    %16 = arith.addf %14, %15 : vector<8x384xf32>
    %17 = vector.extract_strided_slice %11 {offsets = [0, 0], sizes = [8, 128], strides = [1, 1]} : vector<8x384xf32> to vector<8x128xf32>
    %18 = vector.extract_strided_slice %11 {offsets = [0, 128], sizes = [8, 128], strides = [1, 1]} : vector<8x384xf32> to vector<8x128xf32>
    %19 = vector.extract_strided_slice %11 {offsets = [0, 256], sizes = [8, 128], strides = [1, 1]} : vector<8x384xf32> to vector<8x128xf32>
    %20 = vector.extract_strided_slice %16 {offsets = [0, 0], sizes = [8, 128], strides = [1, 1]} : vector<8x384xf32> to vector<8x128xf32>
    %21 = vector.extract_strided_slice %16 {offsets = [0, 128], sizes = [8, 128], strides = [1, 1]} : vector<8x384xf32> to vector<8x128xf32>
    %22 = vector.extract_strided_slice %16 {offsets = [0, 256], sizes = [8, 128], strides = [1, 1]} : vector<8x384xf32> to vector<8x128xf32>
    %23 = arith.addf %17, %20 : vector<8x128xf32>
    %24 = arith.negf %23 : vector<8x128xf32>
    %25 = math.exp %24 : vector<8x128xf32>
    %cst_15 = arith.constant 1.000000e+00 : f32
    %26 = vector.broadcast %cst_15 : f32 to vector<8x128xf32>
    %27 = arith.addf %26, %25 : vector<8x128xf32>
    %28 = arith.divf %26, %27 : vector<8x128xf32>
    %29 = arith.addf %18, %21 : vector<8x128xf32>
    %30 = arith.negf %29 : vector<8x128xf32>
    %31 = math.exp %30 : vector<8x128xf32>
    %cst_16 = arith.constant 1.000000e+00 : f32
    %32 = vector.broadcast %cst_16 : f32 to vector<8x128xf32>
    %33 = arith.addf %32, %31 : vector<8x128xf32>
    %34 = arith.divf %32, %33 : vector<8x128xf32>
    %35 = arith.mulf %28, %22 : vector<8x128xf32>
    %36 = arith.addf %19, %35 : vector<8x128xf32>
    %37 = math.tanh %36 : vector<8x128xf32>
    %cst_17 = arith.constant 1.000000e+00 : f32
    %38 = vector.broadcast %cst_17 : f32 to vector<8x128xf32>
    %39 = arith.subf %38, %34 : vector<8x128xf32>
    %40 = arith.mulf %39, %37 : vector<8x128xf32>
    %41 = arith.mulf %34, %12 : vector<8x128xf32>
    %42 = arith.addf %40, %41 : vector<8x128xf32>
    %43 = arith.truncf %42 : vector<8x128xf32> to vector<8x128xbf16>
    %c0_18 = arith.constant 0 : index
    %c0_19 = arith.constant 0 : index
    %44 = vector.load %arg6[%c0_18, %c0_19] : memref<128x128xbf16, #tpu.memory_space<vmem>>, vector<128x128xbf16>
    %cst_20 = arith.constant dense<0.000000e+00> : vector<8x128xf32>
    %45 = tpu.matmul %43, %44, %cst_20 {dimension_numbers = #tpu.dot_dimension_numbers<[1], [0], [0], [1], [0, 0, 1, 1], [], []>} : vector<8x128xbf16>, vector<128x128xbf16>, vector<8x128xf32> -> vector<8x128xf32>
    %c0_21 = arith.constant 0 : index
    %c0_22 = arith.constant 0 : index
    %46 = vector.load %arg7[%c0_21, %c0_22] : memref<1x128xf32, #tpu.memory_space<vmem>>, vector<1x128xf32>
    %47 = vector.broadcast %46 : vector<1x128xf32> to vector<8x128xf32>
    %48 = arith.addf %45, %47 : vector<8x128xf32>
    %cst_23 = arith.constant dense<0xFF800000> : vector<8xf32>
    %49 = vector.multi_reduction <maximumf>, %48, %cst_23 [1] : vector<8x128xf32> to vector<8xf32>
    %50 = vector.shape_cast %49 : vector<8xf32> to vector<8x1xf32>
    %51 = vector.broadcast %50 : vector<8x1xf32> to vector<8x128xf32>
    %52 = arith.subf %48, %51 : vector<8x128xf32>
    %53 = math.exp %52 : vector<8x128xf32>
    %54 = tpu.iota {dimensions = array<i32: 1>} : vector<8x128xi32>
    %c64_i32 = arith.constant 64 : i32
    %55 = vector.broadcast %c64_i32 : i32 to vector<8x128xi32>
    %56 = arith.cmpi slt, %54, %55 : vector<8x128xi32>
    %cst_24 = arith.constant 0.000000e+00 : f32
    %57 = vector.broadcast %cst_24 : f32 to vector<8x128xf32>
    %58 = arith.select %56, %53, %57 : vector<8x128xi1>, vector<8x128xf32>
    %cst_25 = arith.constant dense<0.000000e+00> : vector<8xf32>
    %59 = vector.multi_reduction <add>, %58, %cst_25 [1] : vector<8x128xf32> to vector<8xf32>
    %60 = vector.shape_cast %59 : vector<8xf32> to vector<8x1xf32>
    %61 = vector.broadcast %60 : vector<8x1xf32> to vector<8x128xf32>
    %62 = arith.divf %58, %61 : vector<8x128xf32>
    %c0_26 = arith.constant 0 : index
    %c0_27 = arith.constant 0 : index
    %63 = vector.load %arg8[%c0_26, %c0_27] : memref<8x128xf32, #tpu.memory_space<vmem>>, vector<8x128xf32>
    tpu.vector_store %arg8[%c0_26, %c0_27], %62 {strides = array<i32>} : memref<8x128xf32, #tpu.memory_space<vmem>>, vector<8x128xf32>,
    %c1_i32 = arith.constant 1 : i32
    %c8_i32 = arith.constant 8 : i32
    %64 = arith.muli %c1_i32, %c8_i32 : i32
    %65 = tpu.assume_multiple %64, 8 : i32
    %66 = arith.index_cast %65 : i32 to index
    %c0_28 = arith.constant 0 : index
    %67 = vector.load %arg10[%66, %c0_28] : memref<32x384xf32, #tpu.memory_space<vmem>>, vector<8x384xf32>
    %68 = arith.truncf %42 : vector<8x128xf32> to vector<8x128xbf16>
    %cst_29 = arith.constant dense<0.000000e+00> : vector<8x384xf32>
    %69 = tpu.matmul %68, %9, %cst_29 {dimension_numbers = #tpu.dot_dimension_numbers<[1], [0], [0], [1], [0, 0, 1, 1], [], []>} : vector<8x128xbf16>, vector<128x384xbf16>, vector<8x384xf32> -> vector<8x384xf32>
    %70 = vector.broadcast %10 : vector<1x384xf32> to vector<8x384xf32>
    %71 = arith.addf %69, %70 : vector<8x384xf32>
    %72 = vector.extract_strided_slice %67 {offsets = [0, 0], sizes = [8, 128], strides = [1, 1]} : vector<8x384xf32> to vector<8x128xf32>
    %73 = vector.extract_strided_slice %67 {offsets = [0, 128], sizes = [8, 128], strides = [1, 1]} : vector<8x384xf32> to vector<8x128xf32>
    %74 = vector.extract_strided_slice %67 {offsets = [0, 256], sizes = [8, 128], strides = [1, 1]} : vector<8x384xf32> to vector<8x128xf32>
    %75 = vector.extract_strided_slice %71 {offsets = [0, 0], sizes = [8, 128], strides = [1, 1]} : vector<8x384xf32> to vector<8x128xf32>
    %76 = vector.extract_strided_slice %71 {offsets = [0, 128], sizes = [8, 128], strides = [1, 1]} : vector<8x384xf32> to vector<8x128xf32>
    %77 = vector.extract_strided_slice %71 {offsets = [0, 256], sizes = [8, 128], strides = [1, 1]} : vector<8x384xf32> to vector<8x128xf32>
    %78 = arith.addf %72, %75 : vector<8x128xf32>
    %79 = arith.negf %78 : vector<8x128xf32>
    %80 = math.exp %79 : vector<8x128xf32>
    %cst_30 = arith.constant 1.000000e+00 : f32
    %81 = vector.broadcast %cst_30 : f32 to vector<8x128xf32>
    %82 = arith.addf %81, %80 : vector<8x128xf32>
    %83 = arith.divf %81, %82 : vector<8x128xf32>
    %84 = arith.addf %73, %76 : vector<8x128xf32>
    %85 = arith.negf %84 : vector<8x128xf32>
    %86 = math.exp %85 : vector<8x128xf32>
    %cst_31 = arith.constant 1.000000e+00 : f32
    %87 = vector.broadcast %cst_31 : f32 to vector<8x128xf32>
    %88 = arith.addf %87, %86 : vector<8x128xf32>
    %89 = arith.divf %87, %88 : vector<8x128xf32>
    %90 = arith.mulf %83, %77 : vector<8x128xf32>
    %91 = arith.addf %74, %90 : vector<8x128xf32>
    %92 = math.tanh %91 : vector<8x128xf32>
    %cst_32 = arith.constant 1.000000e+00 : f32
    %93 = vector.broadcast %cst_32 : f32 to vector<8x128xf32>
    %94 = arith.subf %93, %89 : vector<8x128xf32>
    %95 = arith.mulf %94, %92 : vector<8x128xf32>
    %96 = arith.mulf %89, %42 : vector<8x128xf32>
    %97 = arith.addf %95, %96 : vector<8x128xf32>
    %c2_i32 = arith.constant 2 : i32
    %c8_i32_33 = arith.constant 8 : i32
    %98 = arith.muli %c2_i32, %c8_i32_33 : i32
    %99 = tpu.assume_multiple %98, 8 : i32
    %100 = arith.index_cast %99 : i32 to index
    %c0_34 = arith.constant 0 : index
    %101 = vector.load %arg10[%100, %c0_34] : memref<32x384xf32, #tpu.memory_space<vmem>>, vector<8x384xf32>
    %102 = arith.truncf %97 : vector<8x128xf32> to vector<8x128xbf16>
    %cst_35 = arith.constant dense<0.000000e+00> : vector<8x384xf32>
    %103 = tpu.matmul %102, %9, %cst_35 {dimension_numbers = #tpu.dot_dimension_numbers<[1], [0], [0], [1], [0, 0, 1, 1], [], []>} : vector<8x128xbf16>, vector<128x384xbf16>, vector<8x384xf32> -> vector<8x384xf32>
    %104 = vector.broadcast %10 : vector<1x384xf32> to vector<8x384xf32>
    %105 = arith.addf %103, %104 : vector<8x384xf32>
    %106 = vector.extract_strided_slice %101 {offsets = [0, 0], sizes = [8, 128], strides = [1, 1]} : vector<8x384xf32> to vector<8x128xf32>
    %107 = vector.extract_strided_slice %101 {offsets = [0, 128], sizes = [8, 128], strides = [1, 1]} : vector<8x384xf32> to vector<8x128xf32>
    %108 = vector.extract_strided_slice %101 {offsets = [0, 256], sizes = [8, 128], strides = [1, 1]} : vector<8x384xf32> to vector<8x128xf32>
    %109 = vector.extract_strided_slice %105 {offsets = [0, 0], sizes = [8, 128], strides = [1, 1]} : vector<8x384xf32> to vector<8x128xf32>
    %110 = vector.extract_strided_slice %105 {offsets = [0, 128], sizes = [8, 128], strides = [1, 1]} : vector<8x384xf32> to vector<8x128xf32>
    %111 = vector.extract_strided_slice %105 {offsets = [0, 256], sizes = [8, 128], strides = [1, 1]} : vector<8x384xf32> to vector<8x128xf32>
    %112 = arith.addf %106, %109 : vector<8x128xf32>
    %113 = arith.negf %112 : vector<8x128xf32>
    %114 = math.exp %113 : vector<8x128xf32>
    %cst_36 = arith.constant 1.000000e+00 : f32
    %115 = vector.broadcast %cst_36 : f32 to vector<8x128xf32>
    %116 = arith.addf %115, %114 : vector<8x128xf32>
    %117 = arith.divf %115, %116 : vector<8x128xf32>
    %118 = arith.addf %107, %110 : vector<8x128xf32>
    %119 = arith.negf %118 : vector<8x128xf32>
    %120 = math.exp %119 : vector<8x128xf32>
    %cst_37 = arith.constant 1.000000e+00 : f32
    %121 = vector.broadcast %cst_37 : f32 to vector<8x128xf32>
    %122 = arith.addf %121, %120 : vector<8x128xf32>
    %123 = arith.divf %121, %122 : vector<8x128xf32>
    %124 = arith.mulf %117, %111 : vector<8x128xf32>
    %125 = arith.addf %108, %124 : vector<8x128xf32>
    %126 = math.tanh %125 : vector<8x128xf32>
    %cst_38 = arith.constant 1.000000e+00 : f32
    %127 = vector.broadcast %cst_38 : f32 to vector<8x128xf32>
    %128 = arith.subf %127, %123 : vector<8x128xf32>
    %129 = arith.mulf %128, %126 : vector<8x128xf32>
    %130 = arith.mulf %123, %97 : vector<8x128xf32>
    %131 = arith.addf %129, %130 : vector<8x128xf32>
    %c3_i32 = arith.constant 3 : i32
    %c8_i32_39 = arith.constant 8 : i32
    %132 = arith.muli %c3_i32, %c8_i32_39 : i32
    %133 = tpu.assume_multiple %132, 8 : i32
    %134 = arith.index_cast %133 : i32 to index
    %c0_40 = arith.constant 0 : index
    %135 = vector.load %arg10[%134, %c0_40] : memref<32x384xf32, #tpu.memory_space<vmem>>, vector<8x384xf32>
    %136 = arith.truncf %131 : vector<8x128xf32> to vector<8x128xbf16>
    %cst_41 = arith.constant dense<0.000000e+00> : vector<8x384xf32>
    %137 = tpu.matmul %136, %9, %cst_41 {dimension_numbers = #tpu.dot_dimension_numbers<[1], [0], [0], [1], [0, 0, 1, 1], [], []>} : vector<8x128xbf16>, vector<128x384xbf16>, vector<8x384xf32> -> vector<8x384xf32>
    %138 = vector.broadcast %10 : vector<1x384xf32> to vector<8x384xf32>
    %139 = arith.addf %137, %138 : vector<8x384xf32>
    %140 = vector.extract_strided_slice %135 {offsets = [0, 0], sizes = [8, 128], strides = [1, 1]} : vector<8x384xf32> to vector<8x128xf32>
    %141 = vector.extract_strided_slice %135 {offsets = [0, 128], sizes = [8, 128], strides = [1, 1]} : vector<8x384xf32> to vector<8x128xf32>
    %142 = vector.extract_strided_slice %135 {offsets = [0, 256], sizes = [8, 128], strides = [1, 1]} : vector<8x384xf32> to vector<8x128xf32>
    %143 = vector.extract_strided_slice %139 {offsets = [0, 0], sizes = [8, 128], strides = [1, 1]} : vector<8x384xf32> to vector<8x128xf32>
    %144 = vector.extract_strided_slice %139 {offsets = [0, 128], sizes = [8, 128], strides = [1, 1]} : vector<8x384xf32> to vector<8x128xf32>
    %145 = vector.extract_strided_slice %139 {offsets = [0, 256], sizes = [8, 128], strides = [1, 1]} : vector<8x384xf32> to vector<8x128xf32>
    %146 = arith.addf %140, %143 : vector<8x128xf32>
    %147 = arith.negf %146 : vector<8x128xf32>
    %148 = math.exp %147 : vector<8x128xf32>
    %cst_42 = arith.constant 1.000000e+00 : f32
    %149 = vector.broadcast %cst_42 : f32 to vector<8x128xf32>
    %150 = arith.addf %149, %148 : vector<8x128xf32>
    %151 = arith.divf %149, %150 : vector<8x128xf32>
    %152 = arith.addf %141, %144 : vector<8x128xf32>
    %153 = arith.negf %152 : vector<8x128xf32>
    %154 = math.exp %153 : vector<8x128xf32>
    %cst_43 = arith.constant 1.000000e+00 : f32
    %155 = vector.broadcast %cst_43 : f32 to vector<8x128xf32>
    %156 = arith.addf %155, %154 : vector<8x128xf32>
    %157 = arith.divf %155, %156 : vector<8x128xf32>
    %158 = arith.mulf %151, %145 : vector<8x128xf32>
    %159 = arith.addf %142, %158 : vector<8x128xf32>
    %160 = math.tanh %159 : vector<8x128xf32>
    %cst_44 = arith.constant 1.000000e+00 : f32
    %161 = vector.broadcast %cst_44 : f32 to vector<8x128xf32>
    %162 = arith.subf %161, %157 : vector<8x128xf32>
    %163 = arith.mulf %162, %160 : vector<8x128xf32>
    %164 = arith.mulf %157, %131 : vector<8x128xf32>
    %165 = arith.addf %163, %164 : vector<8x128xf32>
    %c3_i32_45 = arith.constant 3 : i32
    %c0_46 = arith.constant 0 : index
    %c0_47 = arith.constant 0 : index
    %166 = vector.load %arg9[%c0_46, %c0_47] : memref<8x128xf32, #tpu.memory_space<vmem>>, vector<8x128xf32>
    tpu.vector_store %arg9[%c0_46, %c0_47], %165 {strides = array<i32>} : memref<8x128xf32, #tpu.memory_space<vmem>>, vector<8x128xf32>,
    return
  }
}

</mosaic_0001>

<bundles_post_ra>
// kernel: decoder_gru_forward.1
= control target key start
LH: loop header
LB: loop body
LE: loop exit
PB: predicated region body
PF: predicated region fallthrough
CT: control target
= control target key end

     0   :  { %v1314_v2 = vmov 0   ;;  %vm108_vm0 = vcmask 261120   ;;  %v1315_v28 = vmov 0.0   ;;  %vm1316_vm1 = vmmov 0   ;;  %s1795_s0 = inlined_call_operand.vmem [shape: bf16[32,32], index: 0, kind: input, shape index: {}]   ;;  %s1796_s1 = inlined_call_operand.vmem [shape: f32[8,128], index: 1, kind: input, shape index: {}]   ;;  %s1797_s2 = inlined_call_operand.vmem [shape: bf16[32,384], index: 2, kind: input, shape index: {}]   ;;  %s1798_s3 = inlined_call_operand.vmem [shape: bf16[128,384], index: 3, kind: input, shape index: {}]   ;;  %s1799_s4 = inlined_call_operand.vmem [shape: f32[1,384], index: 4, kind: input, shape index: {}]   ;;  %s1800_s5 = inlined_call_operand.vmem [shape: f32[1,384], index: 5, kind: input, shape index: {}]   ;;  %s1801_s6 = inlined_call_operand.vmem [shape: bf16[128,128], index: 6, kind: input, shape index: {}]   ;;  %s1802_s7 = inlined_call_operand.vmem [shape: f32[1,128], index: 7, kind: input, shape index: {}]   ;;  %s1803_s8 = inlined_call_operand.hbm [shape: f32[8,128], index: 8, kind: output, shape index: {0}]   ;;  %s1804_s9 = inlined_call_operand.vmem [shape: f32[8,128], index: 9, kind: output, shape index: {1}]  }
   0x1   :  { %v1371_v0 = vld [vmem:[%s1798_s3 + $0x4] ss:$12 sps:$4 sm:$0xff]   ;;  %v1376_v1 = vld [vmem:[%s1798_s3] ss:$12 sps:$4 sm:$0xff]   ;;  %147 = vmatprep.mubr.bf16.mxu1 %v1314_v2  ;;  %440 = vmatprep.mubr.bf16.mxu0 %v1314_v2  ;;  %v1391_v5 = vld [vmem:[%s1798_s3 + $0x1c] ss:$12 sps:$4 sm:$0xff]  }
   0x2   :  { %408 = vmatprep.subr.bf16.mxu0 %v1371_v0  ;;  %v1201_v3 = vld [vmem:[%s1797_s2 + $0x4] ss:$12 sps:$4 sm:$0xff]   ;;  %v1203_v4 = vld [vmem:[%s1797_s2] ss:$12 sps:$4 sm:$0xff]   ;;  %v1207_v7 = vld [vmem:[%s1797_s2 + $0x1c] ss:$12 sps:$4 sm:$0xff]  }
   0x3   :  { %409 = vmatpush1.bf16.msra.mxu0 %v1376_v1  ;;  %v1396_v6 = vld [vmem:[%s1798_s3 + $0x18] ss:$12 sps:$4 sm:$0xff]   ;;  %115 = vmatprep.subr.bf16.mxu1 %v1201_v3  ;;  %v1408_v9 = vld [vmem:[%s1798_s3 + $0x34] ss:$12 sps:$4 sm:$0xff]   ;;  %v1413_v10 = vld [vmem:[%s1798_s3 + $0x30] ss:$12 sps:$4 sm:$0xff]  }
   0x4   :  { %116 = vmatpush1.bf16.msra.mxu1 %v1203_v4  ;;  %410 = vmatprep.subr.bf16.mxu0 %v1391_v5  ;;  %v1209_v8 = vld [vmem:[%s1797_s2 + $0x18] ss:$12 sps:$4 sm:$0xff]   ;;  %v33_v11 = vld [vmem:[%s1795_s0] sm:$0xf]  ;;  %v1213_v15 = vld [vmem:[%s1797_s2 + $0x8] ss:$12 sps:$4 sm:$0xff]  }
   0x5   :  { %117 = vmatprep.subr.bf16.mxu1 %v1207_v7  ;;  %v34_v12 = vld [vmem:[%s1795_s0 + $0x4] sm:$0xf]  ;;  %v37_v13 = vmax.bf16 %v1314_v2, %v33_v11  ;;  %v1431_v16 = vld [vmem:[%s1798_s3 + $0x4c] ss:$12 sps:$4 sm:$0xff]   ;;  %v1436_v18 = vld [vmem:[%s1798_s3 + $0x48] ss:$12 sps:$4 sm:$0xff]  }
   0x6   :  { %v38_v14 = vmax.bf16 %v1314_v2, %v34_v12  ;;  %v1441_v19 = vld [vmem:[%s1798_s3 + $0x64] ss:$12 sps:$4 sm:$0xff]   ;;  %v35_v20 = vld [vmem:[%s1795_s0 + $0x8] sm:$0xf]  ;;  %v36_v21 = vld [vmem:[%s1795_s0 + $0xc] sm:$0xf] }
   0x7   :  { %411 = vmatpush1.bf16.msra.mxu0 %v1396_v6  ;;  %v39_v22 = vmax.bf16 %v1314_v2, %v35_v20  ;;  %v40_v23 = vmax.bf16 %v1314_v2, %v36_v21  ;;  %v1220_v24 = vld [vmem:[%s1797_s2 + $0x20] ss:$12 sps:$4 sm:$0xff]   ;;  %v1468_v27 = vld [vmem:[%s1798_s3 + $0x7c] ss:$12 sps:$4 sm:$0xff]   ;;  %v1475_v29 = vld [vmem:[%s1798_s3 + $0x78] ss:$12 sps:$4 sm:$0xff]  }
   0x8   :  { %412 = vmatprep.subr.bf16.mxu0 %v1408_v9  ;;  %118 = vmatpush1.bf16.msra.mxu1 %v1209_v8  ;;  %v984_v17 = vcombine.low %v37_v13, %v38_v14  ;;  %v1462_v25 = vld [vmem:[%s1798_s3 + $0x60] ss:$12 sps:$4 sm:$0xff]   ;;  %v1488_v31 = vld [vmem:[%s1798_s3 + $0x90] ss:$12 sps:$4 sm:$0xff]   ;;  %v1494_v32 = vld [vmem:[%s1798_s3 + $0x8] ss:$12 sps:$4 sm:$0xff]  }
   0x9   :  { %1086 = vmatprep.subr.bf16.mxu1 %v1213_v15  ;;  %v985_v26 = vcombine.low %v39_v22, %v40_v23  ;;  %v1482_v30 = vld [vmem:[%s1798_s3 + $0x94] ss:$12 sps:$4 sm:$0xff]   ;;  %v1500_v33 = vld [vmem:[%s1798_s3 + $0xac] ss:$12 sps:$4 sm:$0xff]  }
   0xa   :  { %v1505_v34 = vld [vmem:[%s1798_s3 + $0xa8] ss:$12 sps:$4 sm:$0xff]   ;;  %v1510_v35 = vld [vmem:[%s1796_s1] sm:$0xff] }
   0xb   :  { %413 = vmatpush1.bf16.msra.mxu0 %v1413_v10  ;;  %992 = vmatmul.mubr.msk.bf16.vlgmr.msra.gmra.mrb[0].mxu1 %vm108_vm0, %v984_v17  ;;  %v1516_v36 = vld [vmem:[%s1798_s3 + $0x20] ss:$12 sps:$4 sm:$0xff]   ;;  %v263_v37 = vpack.c.bf16 %v1510_v35, %v1510_v35 }
   0xc   :  { %414 = vmatprep.subr.bf16.mxu0 %v1431_v16  ;;  %1087 = vmatpush3.bf16.msra.mxu1 %v1213_v15 }
   0xd   :  { %157 = vmatprep.mubr.bf16.mxu1 %v1314_v2  ;;  %1088 = vmatprep.subr.bf16.mxu1 %v1220_v24 }
   0xf   :  { %415 = vmatpush1.bf16.msra.mxu0 %v1436_v18 }
  0x10   :  { %416 = vmatprep.subr.bf16.mxu0 %v1441_v19  ;;  %1089 = vmatpush3.bf16.msra.mxu1 %v1220_v24 }
  0x11   :  { %1094 = vmatprep.subr.bf16.mxu1 %v1315_v28 }
  0x13   :  { %417 = vmatpush1.bf16.msra.mxu0 %v1462_v25  ;;  %993 = vmatmul.mubr.msk.bf16.gmra.mrb[4].mxu1 %vm108_vm0, %v985_v26 }
  0x14   :  { %418 = vmatprep.subr.bf16.mxu0 %v1468_v27  ;;  %1090 = vmatprep.mubr.msk.bf16.mxu1 %vm108_vm0, %v984_v17 }
  0x17   :  { %419 = vmatpush1.bf16.msra.mxu0 %v1475_v29 }
  0x18   :  { %420 = vmatprep.subr.bf16.mxu0 %v1482_v30 }
  0x1b   :  { %421 = vmatpush1.bf16.msra.mxu0 %v1488_v31  ;;  %1091 = vmatmul.mubr.msk.bf16.vlgmr.msra.gmra.mrb[8].mxu1 %vm108_vm0, %v985_v26 }
  0x1c   :  { %422 = vmatprep.subr.bf16.mxu0 %v1500_v33  ;;  %1095 = vmatpush3.bf16.msra.mxu1 %v1494_v32 }
  0x1d   :  { %1110 = vmatprep.mubr.msk.bf16.mxu1 %vm1316_vm1, %v1315_v28  ;;  %1096 = vmatprep.subr.bf16.mxu1 %v1315_v28 }
  0x1e   :  { %15 = vsyncpa [#allocation4], 0  ;;  %v1532_v38 = vld [vmem:[%s1798_s3 + $0x38] ss:$12 sps:$4 sm:$0xff]   ;;  %v1541_v39 = vld [vmem:[%s1798_s3 + $0x50] ss:$12 sps:$4 sm:$0xff]   ;;  %v51_v52 = vlaneseq }
  0x1f   :  { %423 = vmatpush1.bf16.msra.mxu0 %v1505_v34  ;;  %v1548_v40 = vld [vmem:[%s1798_s3 + $0x68] ss:$12 sps:$4 sm:$0xff]   ;;  %v1555_v41 = vld [vmem:[%s1798_s3 + $0x80] ss:$12 sps:$4 sm:$0xff]   ;;  %v1562_v42 = vld [vmem:[%s1798_s3 + $0x98] ss:$12 sps:$4 sm:$0xff]  }
  0x20   :  { %1114 = vmatprep.subr.bf16.mxu0 %v1315_v28  ;;  %1097 = vmatpush3.bf16.msra.mxu1 %v1516_v36  ;;  %v1569_v43 = vld [vmem:[%s1798_s3 + $0xb0] ss:$12 sps:$4 sm:$0xff]   ;;  %v1238_v44 = vld [vmem:[%s1801_s6] sm:$0xff]   ;;  %v1239_v45 = vld [vmem:[%s1801_s6 + $0x8] sm:$0xff]   ;;  %v52_v53 = vshrl.u32 %v51_v52, 7 }
  0x21   :  { %1098 = vmatprep.subr.bf16.mxu1 %v1315_v28  ;;  %v1240_v46 = vld [vmem:[%s1801_s6 + $0x10] sm:$0xff]   ;;  %v1241_v47 = vld [vmem:[%s1801_s6 + $0x18] sm:$0xff]   ;;  %v1242_v48 = vld [vmem:[%s1801_s6 + $0x20] sm:$0xff]  }
  0x22   :  { %441 = vmatmul.mubr.bf16.vlgmr.msra.gmra.mrb[0].mxu0 %v263_v37  ;;  %v1243_v49 = vld [vmem:[%s1801_s6 + $0x28] sm:$0xff]   ;;  %v1244_v50 = vld [vmem:[%s1801_s6 + $0x30] sm:$0xff]   ;;  %v1245_v51 = vld [vmem:[%s1801_s6 + $0x38] sm:$0xff]   ;;  %v53_v54 = vsub.s32 0, %v52_v53  ;;  %v57_v56 = vsub.s32 1, %v52_v53  ;;  %v61_v11 = vsub.s32 2, %v52_v53 }
  0x23   :  { %1130 = vmatprep.mubr.msk.bf16.mxu0 %vm1316_vm1, %v1315_v28  ;;  %1115 = vmatpush3.bf16.msra.mxu0 %v1238_v44  ;;  %v49_v55 = vld [vmem:[%s1799_s4] sm:$0x7] }
  0x24   :  { %1099 = vmatpush3.bf16.msra.mxu1 %v1532_v38  ;;  %1116 = vmatprep.subr.bf16.mxu0 %v1315_v28  ;;  %v54_v57 = vrot.slane %v49_v55, %v53_v54  ;;  %v58_v59 = vrot.slane %v49_v55, %v57_v56  ;;  %v62_v20 = vrot.slane %v49_v55, %v61_v11  ;;  %v261_v22 = vld [vmem:[%s1800_s5] sm:$0x7] }
  0x25   :  { %1100 = vmatprep.subr.bf16.mxu1 %v1315_v28 }
  0x27   :  { %1117 = vmatpush3.bf16.msra.mxu0 %v1239_v45  ;;  %v1646_v45 = vrot.slane %v261_v22, %v53_v54 }
  0x28   :  { %1101 = vmatpush3.bf16.msra.mxu1 %v1541_v39  ;;  %1118 = vmatprep.subr.bf16.mxu0 %v1315_v28 }
  0x29   :  { %1102 = vmatprep.subr.bf16.mxu1 %v1315_v28 }
  0x2b   :  { %1119 = vmatpush3.bf16.msra.mxu0 %v1240_v46 }
  0x2c   :  { %1103 = vmatpush3.bf16.msra.mxu1 %v1548_v40  ;;  %1120 = vmatprep.subr.bf16.mxu0 %v1315_v28 }
  0x2d   :  { %1104 = vmatprep.subr.bf16.mxu1 %v1315_v28 }
  0x2f   :  { %1121 = vmatpush3.bf16.msra.mxu0 %v1241_v47  ;;  %v1650_v47 = vrot.slane %v261_v22, %v57_v56  ;;  %v1654_v56 = vrot.slane %v261_v22, %v61_v11 }
  0x30   :  { %1105 = vmatpush3.bf16.msra.mxu1 %v1555_v41  ;;  %1122 = vmatprep.subr.bf16.mxu0 %v1315_v28 }
  0x31   :  { %1106 = vmatprep.subr.bf16.mxu1 %v1315_v28 }
  0x33   :  { %1123 = vmatpush3.bf16.msra.mxu0 %v1242_v48 }
  0x34   :  { %1107 = vmatpush3.bf16.msra.mxu1 %v1562_v42  ;;  %1124 = vmatprep.subr.bf16.mxu0 %v1315_v28 }
  0x35   :  { %1108 = vmatprep.subr.bf16.mxu1 %v1315_v28 }
  0x37   :  { %1125 = vmatpush3.bf16.msra.mxu0 %v1243_v49 }
  0x38   :  { %1109 = vmatpush3.bf16.msra.mxu1 %v1569_v43  ;;  %1126 = vmatprep.subr.bf16.mxu0 %v1315_v28 }
  0x39   :  { %642 = vmatprep.subr.bf16.mxu1 %v1371_v0 }
  0x3b   :  { %1111 = vmatmul.mubr.bf16.vlgmr.msra.gmra.mrb[12].mxu1 %v263_v37  ;;  %1127 = vmatpush3.bf16.msra.mxu0 %v1244_v50 }
  0x3c   :  { %643 = vmatpush1.bf16.msra.mxu1 %v1376_v1  ;;  %674 = vmatprep.mubr.bf16.mxu1 %v1314_v2 }
  0x3d   :  { %644 = vmatprep.subr.bf16.mxu1 %v1391_v5  ;;  %1128 = vmatprep.subr.bf16.mxu0 %v1315_v28 }
  0x3f   :  { %1129 = vmatpush3.bf16.msra.mxu0 %v1245_v51 }
  0x40   :  { %645 = vmatpush1.bf16.msra.mxu1 %v1396_v6  ;;  %1134 = vmatprep.subr.bf16.mxu0 %v1315_v28 }
  0x41   :  { %646 = vmatprep.subr.bf16.mxu1 %v1408_v9 }
  0x44   :  { %647 = vmatpush1.bf16.msra.mxu1 %v1413_v10 }
  0x45   :  { %648 = vmatprep.subr.bf16.mxu1 %v1431_v16 }
  0x48   :  { %649 = vmatpush1.bf16.msra.mxu1 %v1436_v18 }
  0x49   :  { %650 = vmatprep.subr.bf16.mxu1 %v1441_v19 }
  0x4c   :  { %651 = vmatpush1.bf16.msra.mxu1 %v1462_v25 }
  0x4d   :  { %652 = vmatprep.subr.bf16.mxu1 %v1468_v27 }
  0x50   :  { %653 = vmatpush1.bf16.msra.mxu1 %v1475_v29 }
  0x51   :  { %654 = vmatprep.subr.bf16.mxu1 %v1482_v30 }
  0x54   :  { %655 = vmatpush1.bf16.msra.mxu1 %v1488_v31 }
  0x55   :  { %656 = vmatprep.subr.bf16.mxu1 %v1500_v33 }
  0x58   :  { %657 = vmatpush1.bf16.msra.mxu1 %v1505_v34 }
  0x59   :  { %751 = vmatprep.subr.bf16.mxu1 %v1371_v0 }
  0xde   :  { %v149_v58 = vpop.f32.mrb[0].mxu1 }
  0xdf   :  { %v151_v60 = vpop.f32.mrb[1].mxu1  ;;  %v150_v49 = vadd.f32 %v149_v58, %v54_v57 }
  0xe0   :  { %v153_v61 = vpop.f32.mrb[2].mxu1  ;;  %v152_v53 = vadd.f32 %v151_v60, %v58_v59 }
  0xe1   :  { %v1627_v62 = vadd.f32 %v153_v61, %v54_v57  ;;  %v155_v63 = vpop.f32.mrb[3].mxu1 }
  0xe2   :  { %v1629_v3 = vadd.f32 %v155_v63, %v58_v59 }
  0xe6   :  { %v159_v4 = vpop.f32.mrb[4].mxu1 }
  0xe7   :  { %v1631_v7 = vadd.f32 %v159_v4, %v54_v57  ;;  %v161_v8 = vpop.f32.mrb[5].mxu1 }
  0xe8   :  { %v1633_v12 = vadd.f32 %v161_v8, %v58_v59  ;;  %v163_v13 = vpop.f32.mrb[6].mxu1 }
  0xe9   :  { %v1635_v14 = vadd.f32 %v163_v13, %v54_v57  ;;  %v165_v15 = vpop.f32.mrb[7].mxu1 }
  0xea   :  { %v1637_v17 = vadd.f32 %v165_v15, %v58_v59 }
  0xee   :  { %v1092_v21 = vpop.f32.mrb[8].mxu1 }
  0xef   :  { %v1642_v23 = vadd.f32 %v1092_v21, %v62_v20  ;;  %v202_v24 = vpop.f32.mrb[9].mxu1 }
  0xf0   :  { %v1093_v26 = vpop.f32.mrb[10].mxu1 }
  0xf1   :  { %v1644_v37 = vadd.f32 %v1093_v26, %v62_v20  ;;  %v205_v44 = vpop.f32.mrb[11].mxu1 }
  0xf2   :  { %v1648_v46 = vadd.f32 %v205_v44, %v62_v20 }
  0xf5   :  { %v442_v48 = vpop.f32.mrb[0].mxu0 }
  0xf6   :  { %v443_v50 = vadd.f32 %v442_v48, %v1646_v45  ;;  %v444_v51 = vpop.f32.mrb[1].mxu0 }
  0xf7   :  { %v445_v55 = vadd.f32 %v444_v51, %v1650_v47  ;;  %v446_v61 = vpop.f32.mrb[2].mxu0 }
  0xf8   :  { %v489_v63 = vadd.f32 %v443_v50, %v150_v49  ;;  %v447_v4 = vpop.f32.mrb[3].mxu0  ;;  %v203_v50 = vadd.f32 %v202_v24, %v62_v20 }
  0xf9   :  { %v496_v8 = vadd.f32 %v445_v55, %v152_v53 }
  0xfa   :  { %v1020_v13 = vmul.f32 -1.442695, %v489_v63 }
  0xfb   :  { %v1021_v54 = vmul.f32 -1.442695, %v496_v8 }
  0xfc   :  { %1246 = vpow2.f32 %v1020_v13 }
  0xfd   :  { %1248 = vpow2.f32 %v1021_v54 }
 0x106   :  { %v1247_v15 = vpop.eup %1246 }
 0x107   :  { %v493_v21 = vadd.f32 1.0, %v1247_v15  ;;  %v1249_v57 = vpop.eup %1248 }
 0x108   :  { %v500_v26 = vadd.f32 1.0, %v1249_v57 }
 0x109   :  { %1250 = vrcp.f32 %v493_v21 }
 0x10a   :  { %1252 = vrcp.f32 %v500_v26 }
 0x10e   :  { %v483_v58 = vpop.f32.mrb[12].mxu1 }
 0x10f   :  { %v484_v59 = vadd.f32 %v483_v58, %v1654_v56  ;;  %v1112_v60 = vpop.f32.mrb[13].mxu1 }
 0x110   :  { %v486_v44 = vpop.f32.mrb[14].mxu1 }
 0x111   :  { %v1113_v48 = vpop.f32.mrb[15].mxu1 }
 0x113   :  { %v1251_v49 = vpop.eup %1250 }
 0x114   :  { %v503_v51 = vmul.f32 %v1251_v49, %v484_v59  ;;  %v1253_v55 = vpop.eup %1252 }
 0x115   :  { %v506_v61 = vsub.f32 1.0, %v1253_v55  ;;  %v508_v11 = vmul.f32 %v1253_v55, %v1510_v35 }
 0x116   :  { %v504_v53 = vadd.f32 %v503_v51, %v203_v50 }
 0x118   :  { %1254 = vtanh.f32 %v504_v53 }
 0x122   :  { %v1255_v63 = vpop.eup %1254 }
 0x123   :  { %v507_v4 = vmul.f32 %v1255_v63, %v506_v61 }
 0x125   :  { %v1658_v22 = vadd.f32 %v508_v11, %v507_v4 }
 0x127   :  { %v510_v8 = vpack.c.bf16 %v1658_v22, %v1658_v22 }
 0x129   :  { %1131 = vmatmul.mubr.bf16.vlgmr.msra.gmra.mrb[4].mxu0 %v510_v8  ;;  %675 = vmatmul.mubr.bf16.vlgmr.msra.gmra.mrb[16].mxu1 %v510_v8 }
 0x12a   :  { %1135 = vmatpush3.bf16.msra.mxu0 %v1494_v32  ;;  %1150 = vmatprep.mubr.msk.bf16.mxu0 %vm1316_vm1, %v1315_v28 }
 0x12b   :  { %1136 = vmatprep.subr.bf16.mxu0 %v1315_v28  ;;  %752 = vmatpush1.bf16.msra.mxu1 %v1376_v1 }
 0x12c   :  { %753 = vmatprep.subr.bf16.mxu1 %v1391_v5  ;;  %783 = vmatprep.mubr.bf16.mxu1 %v1314_v2 }
 0x12e   :  { %1137 = vmatpush3.bf16.msra.mxu0 %v1516_v36 }
 0x12f   :  { %1138 = vmatprep.subr.bf16.mxu0 %v1315_v28  ;;  %754 = vmatpush1.bf16.msra.mxu1 %v1396_v6 }
 0x130   :  { %755 = vmatprep.subr.bf16.mxu1 %v1408_v9 }
 0x132   :  { %1139 = vmatpush3.bf16.msra.mxu0 %v1532_v38 }
 0x133   :  { %1140 = vmatprep.subr.bf16.mxu0 %v1315_v28  ;;  %756 = vmatpush1.bf16.msra.mxu1 %v1413_v10 }
 0x134   :  { %757 = vmatprep.subr.bf16.mxu1 %v1431_v16 }
 0x136   :  { %1141 = vmatpush3.bf16.msra.mxu0 %v1541_v39 }
 0x137   :  { %1142 = vmatprep.subr.bf16.mxu0 %v1315_v28  ;;  %758 = vmatpush1.bf16.msra.mxu1 %v1436_v18 }
 0x138   :  { %759 = vmatprep.subr.bf16.mxu1 %v1441_v19 }
 0x13a   :  { %1143 = vmatpush3.bf16.msra.mxu0 %v1548_v40 }
 0x13b   :  { %1144 = vmatprep.subr.bf16.mxu0 %v1315_v28  ;;  %760 = vmatpush1.bf16.msra.mxu1 %v1462_v25 }
 0x13c   :  { %761 = vmatprep.subr.bf16.mxu1 %v1468_v27 }
 0x13e   :  { %1145 = vmatpush3.bf16.msra.mxu0 %v1555_v41 }
 0x13f   :  { %1146 = vmatprep.subr.bf16.mxu0 %v1315_v28  ;;  %762 = vmatpush1.bf16.msra.mxu1 %v1475_v29 }
 0x140   :  { %763 = vmatprep.subr.bf16.mxu1 %v1482_v30 }
 0x142   :  { %1147 = vmatpush3.bf16.msra.mxu0 %v1562_v42 }
 0x143   :  { %1148 = vmatprep.subr.bf16.mxu0 %v1315_v28  ;;  %764 = vmatpush1.bf16.msra.mxu1 %v1488_v31 }
 0x144   :  { %765 = vmatprep.subr.bf16.mxu1 %v1500_v33 }
 0x146   :  { %1149 = vmatpush3.bf16.msra.mxu0 %v1569_v43 }
 0x147   :  { %1154 = vmatprep.subr.bf16.mxu0 %v1315_v28  ;;  %766 = vmatpush1.bf16.msra.mxu1 %v1505_v34 }
 0x148   :  { %860 = vmatprep.subr.bf16.mxu1 %v1371_v0  ;;  %v1022_v0 = vld [vmem:[%s1802_s7] ss:$0 sm:$0xff]  ;;  %s1317_s7 = smov [#allocation3]  }
 0x149   :  { %1151 = vmatmul.mubr.bf16.vlgmr.msra.gmra.mrb[8].mxu0 %v510_v8  ;;  %s969_s27 = sshll.u32 %s1317_s7, 4  ;;  %s970_s27 = int_to_ptr.vmem [resolvable:$true] %s969_s27 }
 0x14a   :  { %1155 = vmatpush3.bf16.msra.mxu0 %v1494_v32  ;;  %1170 = vmatprep.mubr.msk.bf16.mxu0 %vm1316_vm1, %v1315_v28  ;;  %s1290_s28 = scalar_lea.vmem %s970_s27, 128  ;;  %p1295_p1 = scmp.lt.s32.totalorder %s970_s27, %s970_s27 }
 0x14b   :  { %1156 = vmatprep.subr.bf16.mxu0 %v1315_v28  ;;  %p1291_p0 = scmp.ne.s32.totalorder %s970_s27, %s1290_s28  ;;  %p1296_p2 = scmp.lt.s32.totalorder %s1290_s28, %s1290_s28 }
 0x14d   :  { %p1297_p3 = por %p1296_p2, %p1295_p1 }
 0x14e   :  { %1157 = vmatpush3.bf16.msra.mxu0 %v1516_v36 }
 0x14f   :  { %1158 = vmatprep.subr.bf16.mxu0 %v1315_v28  ;;  %p1298_p4 = pnand %p1297_p3, %p1291_p0 }
 0x152   :  { %1159 = vmatpush3.bf16.msra.mxu0 %v1532_v38 }
 0x153   :  { %1160 = vmatprep.subr.bf16.mxu0 %v1315_v28 }
 0x156   :  { %1161 = vmatpush3.bf16.msra.mxu0 %v1541_v39 }
 0x157   :  { %1162 = vmatprep.subr.bf16.mxu0 %v1315_v28 }
 0x15a   :  { %1163 = vmatpush3.bf16.msra.mxu0 %v1548_v40 }
 0x15b   :  { %1164 = vmatprep.subr.bf16.mxu0 %v1315_v28 }
 0x15e   :  { %1165 = vmatpush3.bf16.msra.mxu0 %v1555_v41 }
 0x15f   :  { %1166 = vmatprep.subr.bf16.mxu0 %v1315_v28 }
 0x162   :  { %1167 = vmatpush3.bf16.msra.mxu0 %v1562_v42 }
 0x163   :  { %1168 = vmatprep.subr.bf16.mxu0 %v1315_v28 }
 0x166   :  { %1169 = vmatpush3.bf16.msra.mxu0 %v1569_v43 }
 0x167   :  { %1174 = vmatprep.subr.bf16.mxu0 %v1315_v28 }
 0x1fc   :  { %v616_v35 = vpop.f32.mrb[4].mxu0  ;;  %v676_v20 = vpop.f32.mrb[16].mxu1 }
 0x1fd   :  { %v1718_v24 = vadd.f32 %v1022_v0, %v616_v35  ;;  %v677_v13 = vadd.f32 %v676_v20, %v1646_v45  ;;  %v1132_v54 = vpop.f32.mrb[5].mxu0  ;;  %v678_v15 = vpop.f32.mrb[17].mxu1 }
 0x1fe   :  { %v679_v21 = vadd.f32 %v678_v15, %v1650_v47  ;;  %v619_v57 = vpop.f32.mrb[6].mxu0  ;;  %v680_v58 = vpop.f32.mrb[18].mxu1 }
 0x1ff   :  { %v723_v26 = vadd.f32 %v677_v13, %v1627_v62  ;;  %v681_v59 = vpop.f32.mrb[19].mxu1  ;;  %622 = vmax.xlane.f32.xlu0 %v1718_v24  ;;  %v1133_v60 = vpop.f32.mrb[7].mxu0 }
 0x200   :  { %v730_v44 = vadd.f32 %v679_v21, %v1629_v3 }
 0x201   :  { %v1031_v48 = vmul.f32 -1.442695, %v723_v26 }
 0x202   :  { %v1032_v49 = vmul.f32 -1.442695, %v730_v44 }
 0x203   :  { %1256 = vpow2.f32 %v1031_v48 }
 0x204   :  { %1258 = vpow2.f32 %v1032_v49 }
 0x20d   :  { %v1257_v50 = vpop.eup %1256 }
 0x20e   :  { %v727_v51 = vadd.f32 1.0, %v1257_v50  ;;  %v1259_v53 = vpop.eup %1258 }
 0x20f   :  { %v734_v55 = vadd.f32 1.0, %v1259_v53 }
 0x210   :  { %1260 = vrcp.f32 %v727_v51 }
 0x211   :  { %1262 = vrcp.f32 %v734_v55 }
 0x21a   :  { %v1261_v62 = vpop.eup %1260 }
 0x21b   :  { %v1263_v35 = vpop.eup %1262 }
 0x21c   :  { %v717_v61 = vpop.f32.mrb[8].mxu0  ;;  %v740_v20 = vsub.f32 1.0, %v1263_v35  ;;  %v742_v15 = vmul.f32 %v1263_v35, %v1658_v22 }
 0x21d   :  { %v718_v63 = vadd.f32 %v717_v61, %v1654_v56  ;;  %v1152_v4 = vpop.f32.mrb[9].mxu0 }
 0x21e   :  { %v720_v11 = vpop.f32.mrb[10].mxu0 }
 0x21f   :  { %v737_v8 = vmul.f32 %v1261_v62, %v718_v63  ;;  %v1153_v0 = vpop.f32.mrb[11].mxu0 }
 0x221   :  { %v738_v3 = vadd.f32 %v737_v8, %v1648_v46 }
 0x223   :  { %1264 = vtanh.f32 %v738_v3 }
 0x22d   :  { %v1265_v13 = vpop.eup %1264 }
 0x22e   :  { %v741_v54 = vmul.f32 %v1265_v13, %v740_v20 }
 0x230   :  { %v1728_v21 = vadd.f32 %v742_v15, %v741_v54 }
 0x232   :  { %v750_v57 = vpack.c.bf16 %v1728_v21, %v1728_v21 }
 0x234   :  { %784 = vmatmul.mubr.bf16.vlgmr.msra.gmra.mrb[20].mxu1 %v750_v57  ;;  %1171 = vmatmul.mubr.bf16.vlgmr.msra.gmra.mrb[12].mxu0 %v750_v57 }
 0x235   :  { %861 = vmatpush1.bf16.msra.mxu1 %v1376_v1  ;;  %1175 = vmatpush3.bf16.msra.mxu0 %v1494_v32 }
 0x236   :  { %862 = vmatprep.subr.bf16.mxu1 %v1391_v5  ;;  %1176 = vmatprep.subr.bf16.mxu0 %v1315_v28 }
 0x237   :  { %892 = vmatprep.mubr.bf16.mxu1 %v1314_v2  ;;  %1190 = vmatprep.mubr.msk.bf16.mxu0 %vm1316_vm1, %v1315_v28 }
 0x239   :  { %863 = vmatpush1.bf16.msra.mxu1 %v1396_v6  ;;  %1177 = vmatpush3.bf16.msra.mxu0 %v1516_v36  ;;  %v628_v6 = vand.u32 127, %v51_v52 }
 0x23a   :  { %864 = vmatprep.subr.bf16.mxu1 %v1408_v9  ;;  %1178 = vmatprep.subr.bf16.mxu0 %v1315_v28 }
 0x23b   :  { %vm629_vm2 = vcmp.lt.s32.totalorder %v628_v6, 64 }
 0x23d   :  { %865 = vmatpush1.bf16.msra.mxu1 %v1413_v10  ;;  %1179 = vmatpush3.bf16.msra.mxu0 %v1532_v38 }
 0x23e   :  { %866 = vmatprep.subr.bf16.mxu1 %v1431_v16  ;;  %1180 = vmatprep.subr.bf16.mxu0 %v1315_v28 }
 0x241   :  { %867 = vmatpush1.bf16.msra.mxu1 %v1436_v18  ;;  %1181 = vmatpush3.bf16.msra.mxu0 %v1541_v39 }
 0x242   :  { %868 = vmatprep.subr.bf16.mxu1 %v1441_v19  ;;  %1182 = vmatprep.subr.bf16.mxu0 %v1315_v28 }
 0x245   :  { %869 = vmatpush1.bf16.msra.mxu1 %v1462_v25  ;;  %1183 = vmatpush3.bf16.msra.mxu0 %v1548_v40 }
 0x246   :  { %870 = vmatprep.subr.bf16.mxu1 %v1468_v27  ;;  %1184 = vmatprep.subr.bf16.mxu0 %v1315_v28 }
 0x249   :  { %871 = vmatpush1.bf16.msra.mxu1 %v1475_v29  ;;  %1185 = vmatpush3.bf16.msra.mxu0 %v1555_v41 }
 0x24a   :  { %872 = vmatprep.subr.bf16.mxu1 %v1482_v30  ;;  %1186 = vmatprep.subr.bf16.mxu0 %v1315_v28 }
 0x24d   :  { %873 = vmatpush1.bf16.msra.mxu1 %v1488_v31  ;;  %1187 = vmatpush3.bf16.msra.mxu0 %v1562_v42 }
 0x24e   :  { %874 = vmatprep.subr.bf16.mxu1 %v1500_v33  ;;  %1188 = vmatprep.subr.bf16.mxu0 %v1315_v28 }
 0x251   :  { %875 = vmatpush1.bf16.msra.mxu1 %v1505_v34  ;;  %1189 = vmatpush3.bf16.msra.mxu0 %v1569_v43 }
 0x28c   :  { %v623_v1 = vpop.xlane.xlu0 %622 }
 0x28d   :  { %v624_v2 = vsub.f32 %v1718_v24, %v623_v1 }
 0x28f   :  { %v625_v5 = vmul.f32 1.442695, %v624_v2 }
 0x291   :  { %1266 = vpow2.f32 %v625_v5 }
 0x29b   :  { %v1267_v9 = vpop.eup %1266 }
 0x29c   :  { %v630_v10 = vsel %vm629_vm2, %v1267_v9, 0.0 }
 0x29d   :  { %631 = vadd.xlane.f32.xlu0 %v630_v10 }
 0x307   :  { %v785_v16 = vpop.f32.mrb[20].mxu1  ;;  %v826_v18 = vpop.f32.mrb[12].mxu0 }
 0x308   :  { %v786_v19 = vadd.f32 %v785_v16, %v1646_v45  ;;  %v787_v25 = vpop.f32.mrb[21].mxu1  ;;  %v1172_v27 = vpop.f32.mrb[13].mxu0  ;;  %v827_v43 = vadd.f32 %v826_v18, %v1654_v56 }
 0x309   :  { %v788_v28 = vadd.f32 %v787_v25, %v1650_v47  ;;  %v789_v29 = vpop.f32.mrb[22].mxu1  ;;  %v829_v30 = vpop.f32.mrb[14].mxu0 }
 0x30a   :  { %v832_v31 = vadd.f32 %v786_v19, %v1631_v7  ;;  %v790_v32 = vpop.f32.mrb[23].mxu1  ;;  %v1173_v33 = vpop.f32.mrb[15].mxu0 }
 0x30b   :  { %v839_v34 = vadd.f32 %v788_v28, %v1633_v12 }
 0x30c   :  { %v1033_v36 = vmul.f32 -1.442695, %v832_v31 }
 0x30d   :  { %v1034_v38 = vmul.f32 -1.442695, %v839_v34 }
 0x30e   :  { %1268 = vpow2.f32 %v1033_v36 }
 0x30f   :  { %1270 = vpow2.f32 %v1034_v38 }
 0x318   :  { %v1269_v39 = vpop.eup %1268 }
 0x319   :  { %v836_v40 = vadd.f32 1.0, %v1269_v39  ;;  %v1271_v41 = vpop.eup %1270 }
 0x31a   :  { %v843_v42 = vadd.f32 1.0, %v1271_v41 }
 0x31b   :  { %1272 = vrcp.f32 %v836_v40 }
 0x31c   :  { %1274 = vrcp.f32 %v843_v42 }
 0x325   :  { %v1273_v52 = vpop.eup %1272 }
 0x326   :  { %v846_v46 = vmul.f32 %v1273_v52, %v827_v43  ;;  %v1275_v12 = vpop.eup %1274 }
 0x327   :  { %v849_v24 = vsub.f32 1.0, %v1275_v12  ;;  %v851_v60 = vmul.f32 %v1275_v12, %v1728_v21 }
 0x328   :  { %v847_v7 = vadd.f32 %v846_v46, %v1642_v23 }
 0x32a   :  { %1276 = vtanh.f32 %v847_v7  ;;  %v632_v22 = vpop.xlane.xlu0 %631 }
 0x32b   :  { %1278 = vrcp.f32 %v632_v22 }
 0x334   :  { %v1277_v58 = vpop.eup %1276 }
 0x335   :  { %v1279_v26 = vpop.eup %1278  ;;  %v850_v59 = vmul.f32 %v1277_v58, %v849_v24 }
 0x336   :  { %v634_v44 = vmul.f32 %v1279_v26, %v630_v10 }
 0x337   :  { %v852_v48 = vadd.f32 %v851_v60, %v850_v59 }
 0x338   :  { %635 = vst [vmem:[#allocation3] sm:$0xff] %v634_v44 }
 0x339   :  { %v859_v49 = vpack.c.bf16 %v852_v48, %v852_v48 }
 0x33b   :  { %893 = vmatmul.mubr.bf16.vlgmr.msra.gmra.mrb[24].mxu1 %v859_v49  ;;  %1191 = vmatmul.mubr.bf16.vlgmr.msra.gmra.mrb[16].mxu0 %v859_v49 }
 0x33c   :  { %1301 = shalt.err (!%p1298_p4)
}
 0x33d   :  { %s1302_s30 = scalar_lea.hbm %s1803_s8, 128 }
 0x33e   :  { %p1303_p5 = scmp.ne.s32.totalorder %s1803_s8, %s1302_s30  ;;  %p1306_p6 = scmp.lt.u32.totalorder %s1302_s30, %s1803_s8 }
 0x340   :  { %p1308_p7 = pnand %p1306_p6, %p1303_p5 }
 0x342   :  { %1311 = shalt.err (!%p1308_p7)
}
 0x343   :  { %972 = dma.vmem_to_hbm [thread:$0]  %s970_s27, 128, %s1803_s8, [#allocation4]  }
 0x40e   :  { %v894_v23 = vpop.f32.mrb[24].mxu1  ;;  %v935_v50 = vpop.f32.mrb[16].mxu0 }
 0x40f   :  { %v895_v51 = vadd.f32 %v894_v23, %v1646_v45  ;;  %v896_v53 = vpop.f32.mrb[25].mxu1  ;;  %v1192_v55 = vpop.f32.mrb[17].mxu0  ;;  %v936_v15 = vadd.f32 %v935_v50, %v1654_v56 }
 0x410   :  { %v897_v61 = vadd.f32 %v896_v53, %v1650_v47  ;;  %v898_v63 = vpop.f32.mrb[26].mxu1  ;;  %v938_v4 = vpop.f32.mrb[18].mxu0 }
 0x411   :  { %v941_v62 = vadd.f32 %v895_v51, %v1635_v14  ;;  %v899_v11 = vpop.f32.mrb[27].mxu1  ;;  %v1193_v8 = vpop.f32.mrb[19].mxu0 }
 0x412   :  { %v948_v0 = vadd.f32 %v897_v61, %v1637_v17 }
 0x413   :  { %v1035_v3 = vmul.f32 -1.442695, %v941_v62 }
 0x414   :  { %v1036_v35 = vmul.f32 -1.442695, %v948_v0 }
 0x415   :  { %1280 = vpow2.f32 %v1035_v3 }
 0x416   :  { %1282 = vpow2.f32 %v1036_v35 }
 0x41f   :  { %v1281_v20 = vpop.eup %1280 }
 0x420   :  { %v945_v13 = vadd.f32 1.0, %v1281_v20  ;;  %v1283_v45 = vpop.eup %1282 }
 0x421   :  { %v952_v54 = vadd.f32 1.0, %v1283_v45 }
 0x422   :  { %1284 = vrcp.f32 %v945_v13 }
 0x423   :  { %1286 = vrcp.f32 %v952_v54 }
 0x42c   :  { %v1285_v47 = vpop.eup %1284 }
 0x42d   :  { %v955_v21 = vmul.f32 %v1285_v47, %v936_v15  ;;  %v1287_v57 = vpop.eup %1286 }
 0x42e   :  { %v958_v1 = vsub.f32 1.0, %v1287_v57  ;;  %v960_v5 = vmul.f32 %v1287_v57, %v852_v48 }
 0x42f   :  { %v956_v14 = vadd.f32 %v955_v21, %v1644_v37 }
 0x431   :  { %1288 = vtanh.f32 %v956_v14 }
 0x43b   :  { %v1289_v17 = vpop.eup %1288 }
 0x43c   :  { %v959_v2 = vmul.f32 %v1289_v17, %v958_v1 }
 0x43e   :  { %v961_v6 = vadd.f32 %v960_v5, %v959_v2 }
 0x440   :  { %962 = vst [vmem:[%s1804_s9] sm:$0xff] %v961_v6 }
 0x441   :  { %1312 = dma.done.wait [#allocation4], 128  }
 0x442   :  { %1313 = vsyncadd [#allocation4], 4294967168 }
 0x443   :  { %980 = vsyncpa [#allocation4], 1 }

</bundles_post_ra>
